<compile_context>
chip_gen: v6e
topology: v6e:2x2x1
jax: 0.10.0
libtpu: 0.0.40
codegen_flags: <defaults>
</compile_context>

<pallas_src>
import jax
import jax.numpy as jnp
from jax.experimental import pallas as pl
from jax.experimental.pallas import tpu as pltpu

HIDDEN_PAD = 128   # lane-dense hidden width (>= fc1_size / fc2_size)
OUT_PAD = 128      # lane-dense output width (>= action_size)


def qnetwork_kernel(x_ref, w1_ref, b1_ref, w2_ref, b2_ref, w3_ref, b3_ref,
                    out_ref):
    # In-kernel f32 -> bf16 cast of the activations (VPU work hidden under the
    # pipeline); weights are already bf16, biases stay f32.
    x = x_ref[...].astype(jnp.bfloat16)
    # fc1 + ReLU  (bf16 MXU feed, f32 accumulate / elementwise)
    h1 = jnp.dot(x, w1_ref[...], preferred_element_type=jnp.float32)
    h1 = jnp.maximum(h1 + b1_ref[...], 0.0)
    # fc2 + ReLU
    h2 = jnp.dot(h1.astype(jnp.bfloat16), w2_ref[...],
                 preferred_element_type=jnp.float32)
    h2 = jnp.maximum(h2 + b2_ref[...], 0.0)
    # fc3 + ReLU (PyTorch forward applies relu to the final layer too)
    h3 = jnp.dot(h2.astype(jnp.bfloat16), w3_ref[...],
                 preferred_element_type=jnp.float32)
    h3 = jnp.maximum(h3 + b3_ref[...], 0.0)
    out_ref[...] = h3.astype(out_ref.dtype)


def _round_up(n, m):
    return ((n + m - 1) // m) * m


def _pad2(a, rows, cols):
    return jnp.pad(a, ((0, rows - a.shape[0]), (0, cols - a.shape[1])))


def prepare_params(params):
    """One-time weight preparation (hoist out of the per-call forward path).

    * accepts 1-D (PyTorch-style) or 2-D biases
    * zero-pads hidden / output widths to lane-dense 128 (numerically exact)
    * casts weights to bf16 (MXU operands); biases stay f32
    """
    def bias2d(b):
        return jnp.asarray(b, jnp.float32).reshape(1, -1)

    w1, b1 = jnp.asarray(params["w1"]), bias2d(params["b1"])
    w2, b2 = jnp.asarray(params["w2"]), bias2d(params["b2"])
    w3, b3 = jnp.asarray(params["w3"]), bias2d(params["b3"])

    state_size = w1.shape[0]
    action_size = w3.shape[1]
    out_pad = max(OUT_PAD, _round_up(action_size, 128))

    return {
        "w1": _pad2(w1, state_size, HIDDEN_PAD).astype(jnp.bfloat16),
        "b1": _pad2(b1, 1, HIDDEN_PAD),
        "w2": _pad2(w2, HIDDEN_PAD, HIDDEN_PAD).astype(jnp.bfloat16),
        "b2": _pad2(b2, 1, HIDDEN_PAD),
        "w3": _pad2(w3, HIDDEN_PAD, out_pad).astype(jnp.bfloat16),
        "b3": _pad2(b3, 1, out_pad),
        "state_size": state_size,
        "action_size": action_size,
        "out_pad": out_pad,
    }


def qnetwork_forward(x, prepared, *, tile_b=1024, out_dtype=jnp.float32):
    """x: (B, state_size) float32.  prepared: output of prepare_params()."""
    w1, b1 = prepared["w1"], prepared["b1"]
    w2, b2 = prepared["w2"], prepared["b2"]
    w3, b3 = prepared["w3"], prepared["b3"]
    state_size = prepared["state_size"]
    action_size = prepared["action_size"]
    out_pad = prepared["out_pad"]

    B = x.shape[0]
    assert x.shape[1] == state_size

    # Batch tile: multiple of 16 (bf16 sublane packing, unmasked loads). Large
    # tiles amortize the ~0.35us per-grid-step overhead; when one tile would
    # cover the whole (large enough) batch, split into 2 steps so the
    # "parallel" grid axis can be sharded across v7x's two TensorCores.
    tb = max(16, _round_up(tile_b, 16))
    TB = min(tb, _round_up(B, 16))
    if B >= 32 and _round_up(B, TB) == TB:
        TB = _round_up(pl.cdiv(B, 2), 16)
    B_pad = _round_up(B, TB)
    if B_pad != B:
        x = jnp.pad(x, ((0, B_pad - B), (0, 0)))

    # Weights/biases: whole-array block with a constant block index -> stay
    # resident in VMEM across all grid steps (no re-DMA).
    resident = lambda a: pl.BlockSpec(a.shape, lambda i: (0, 0))

    out = pl.pallas_call(
        qnetwork_kernel,
        out_shape=jax.ShapeDtypeStruct((B_pad, out_pad), out_dtype),
        grid=(B_pad // TB,),
        in_specs=[
            pl.BlockSpec((TB, state_size), lambda i: (i, 0)),  # x: batch-tiled
            resident(w1), resident(b1),
            resident(w2), resident(b2),
            resident(w3), resident(b3),
        ],
        out_specs=pl.BlockSpec((TB, out_pad), lambda i: (i, 0)),
        compiler_params=pltpu.CompilerParams(
            dimension_semantics=("parallel",),
            vmem_limit_bytes=32 << 20,  # headroom for large tile_b on v5e
        ),
    )(x, w1, b1, w2, b2, w3, b3)

    # Slice off padding: skip the row slice when the batch was not padded.
    if B_pad != B:
        return out[:B, :action_size]
    return out[:, :action_size]


def init_params(key, state_size, action_size, fc1_size=64, fc2_size=64):
    """Deterministic init (uniform, like PyTorch's default Linear init).

    Biases are 1-D, exactly as PyTorch stores them.
    """
    ks = jax.random.split(key, 6)

    def linear(kw, kb, fan_in, fan_out):
        bound = 1.0 / jnp.sqrt(fan_in)
        w = jax.random.uniform(kw, (fan_in, fan_out), jnp.float32,
                               -bound, bound)
        b = jax.random.uniform(kb, (fan_out,), jnp.float32, -bound, bound)
        return w, b

    w1, b1 = linear(ks[0], ks[1], state_size, fc1_size)
    w2, b2 = linear(ks[2], ks[3], fc1_size, fc2_size)
    w3, b3 = linear(ks[4], ks[5], fc2_size, action_size)
    return {"w1": w1, "b1": b1, "w2": w2, "b2": b2, "w3": w3, "b3": b3}


def ref_forward(x, params):
    """Plain-JAX reference with the same bf16-operand / f32-accumulate math."""
    h = x
    for wk, bk in (("w1", "b1"), ("w2", "b2"), ("w3", "b3")):
        h = jnp.dot(h.astype(jnp.bfloat16), params[wk].astype(jnp.bfloat16),
                    preferred_element_type=jnp.float32)
        h = jnp.maximum(h + params[bk].reshape(1, -1), 0.0)
    return h


if __name__ == "__main__":
    key = jax.random.PRNGKey(0)
    k_params, k_x1, k_x2 = jax.random.split(key, 3)

    state_size = 8
    action_size = 4
    raw_params = init_params(k_params, state_size, action_size,
                             fc1_size=64, fc2_size=64)
    prepared = prepare_params(raw_params)   # one-time prep, reused every call

    # Small (inference-sized) batch: single grid step.
    x_small = jax.random.normal(k_x1, (8, state_size), jnp.float32)
    out_small = qnetwork_forward(x_small, prepared)
    jax.block_until_ready(out_small)
    assert out_small.shape == (8, action_size)
    assert jnp.allclose(out_small, ref_forward(x_small, raw_params),
                        atol=1e-3, rtol=1e-3)

    # Training-sized batch: >=2 grid steps over the batch axis.
    x_big = jax.random.normal(k_x2, (512, state_size), jnp.float32)
    out_big = qnetwork_forward(x_big, prepared)
    jax.block_until_ready(out_big)
    assert out_big.shape == (512, action_size)
    assert jnp.allclose(out_big, ref_forward(x_big, raw_params),
                        atol=1e-3, rtol=1e-3)

    print("KERNEL_OK")
</pallas_src>

<mosaic_0001>
module attributes {stable_mosaic.version = 11 : i64} {
  func.func @qnetwork_kernel(%arg0: i32, %arg1: memref<16x8xf32, #tpu.memory_space<vmem>>, %arg2: memref<8x128xbf16, #tpu.memory_space<vmem>>, %arg3: memref<1x128xf32, #tpu.memory_space<vmem>>, %arg4: memref<128x128xbf16, #tpu.memory_space<vmem>>, %arg5: memref<1x128xf32, #tpu.memory_space<vmem>>, %arg6: memref<128x128xbf16, #tpu.memory_space<vmem>>, %arg7: memref<1x128xf32, #tpu.memory_space<vmem>>, %arg8: memref<16x128xf32, #tpu.memory_space<vmem>>) attributes {dimension_semantics = [#tpu.dimension_semantics<parallel>], iteration_bounds = array<i64: 1>, scalar_prefetch = 0 : i64, scratch_operands = 0 : i64, tpu.core_type = #tpu.core_type<tc>, window_params = [{transform_indices = @transform_0, window_bounds = array<i64: 16, 8>}, {pipeline_mode = #tpu.pipeline_mode<synchronous>, transform_indices = @transform_1, window_bounds = array<i64: 8, 128>}, {pipeline_mode = #tpu.pipeline_mode<synchronous>, transform_indices = @transform_2, window_bounds = array<i64: 1, 128>}, {pipeline_mode = #tpu.pipeline_mode<synchronous>, transform_indices = @transform_3, window_bounds = array<i64: 128, 128>}, {pipeline_mode = #tpu.pipeline_mode<synchronous>, transform_indices = @transform_4, window_bounds = array<i64: 1, 128>}, {pipeline_mode = #tpu.pipeline_mode<synchronous>, transform_indices = @transform_5, window_bounds = array<i64: 128, 128>}, {pipeline_mode = #tpu.pipeline_mode<synchronous>, transform_indices = @transform_6, window_bounds = array<i64: 1, 128>}, {transform_indices = @transform_7, window_bounds = array<i64: 16, 128>}]} {
    %c0 = arith.constant 0 : index
    %c0_0 = arith.constant 0 : index
    %0 = vector.load %arg1[%c0, %c0_0] : memref<16x8xf32, #tpu.memory_space<vmem>>, vector<16x8xf32>
    %1 = arith.truncf %0 : vector<16x8xf32> to vector<16x8xbf16>
    %c0_1 = arith.constant 0 : index
    %c0_2 = arith.constant 0 : index
    %2 = vector.load %arg2[%c0_1, %c0_2] : memref<8x128xbf16, #tpu.memory_space<vmem>>, vector<8x128xbf16>
    %cst = arith.constant dense<0.000000e+00> : vector<16x128xf32>
    %3 = tpu.matmul %1, %2, %cst {dimension_numbers = #tpu.dot_dimension_numbers<[1], [0], [0], [1], [0, 0, 1, 1], [], []>} : vector<16x8xbf16>, vector<8x128xbf16>, vector<16x128xf32> -> vector<16x128xf32>
    %c0_3 = arith.constant 0 : index
    %c0_4 = arith.constant 0 : index
    %4 = vector.load %arg3[%c0_3, %c0_4] : memref<1x128xf32, #tpu.memory_space<vmem>>, vector<1x128xf32>
    %5 = vector.broadcast %4 : vector<1x128xf32> to vector<16x128xf32>
    %6 = arith.addf %3, %5 : vector<16x128xf32>
    %cst_5 = arith.constant 0.000000e+00 : f32
    %7 = vector.broadcast %cst_5 : f32 to vector<16x128xf32>
    %8 = arith.maximumf %6, %7 : vector<16x128xf32>
    %9 = arith.truncf %8 : vector<16x128xf32> to vector<16x128xbf16>
    %c0_6 = arith.constant 0 : index
    %c0_7 = arith.constant 0 : index
    %10 = vector.load %arg4[%c0_6, %c0_7] : memref<128x128xbf16, #tpu.memory_space<vmem>>, vector<128x128xbf16>
    %cst_8 = arith.constant dense<0.000000e+00> : vector<16x128xf32>
    %11 = tpu.matmul %9, %10, %cst_8 {dimension_numbers = #tpu.dot_dimension_numbers<[1], [0], [0], [1], [0, 0, 1, 1], [], []>} : vector<16x128xbf16>, vector<128x128xbf16>, vector<16x128xf32> -> vector<16x128xf32>
    %c0_9 = arith.constant 0 : index
    %c0_10 = arith.constant 0 : index
    %12 = vector.load %arg5[%c0_9, %c0_10] : memref<1x128xf32, #tpu.memory_space<vmem>>, vector<1x128xf32>
    %13 = vector.broadcast %12 : vector<1x128xf32> to vector<16x128xf32>
    %14 = arith.addf %11, %13 : vector<16x128xf32>
    %cst_11 = arith.constant 0.000000e+00 : f32
    %15 = vector.broadcast %cst_11 : f32 to vector<16x128xf32>
    %16 = arith.maximumf %14, %15 : vector<16x128xf32>
    %17 = arith.truncf %16 : vector<16x128xf32> to vector<16x128xbf16>
    %c0_12 = arith.constant 0 : index
    %c0_13 = arith.constant 0 : index
    %18 = vector.load %arg6[%c0_12, %c0_13] : memref<128x128xbf16, #tpu.memory_space<vmem>>, vector<128x128xbf16>
    %cst_14 = arith.constant dense<0.000000e+00> : vector<16x128xf32>
    %19 = tpu.matmul %17, %18, %cst_14 {dimension_numbers = #tpu.dot_dimension_numbers<[1], [0], [0], [1], [0, 0, 1, 1], [], []>} : vector<16x128xbf16>, vector<128x128xbf16>, vector<16x128xf32> -> vector<16x128xf32>
    %c0_15 = arith.constant 0 : index
    %c0_16 = arith.constant 0 : index
    %20 = vector.load %arg7[%c0_15, %c0_16] : memref<1x128xf32, #tpu.memory_space<vmem>>, vector<1x128xf32>
    %21 = vector.broadcast %20 : vector<1x128xf32> to vector<16x128xf32>
    %22 = arith.addf %19, %21 : vector<16x128xf32>
    %cst_17 = arith.constant 0.000000e+00 : f32
    %23 = vector.broadcast %cst_17 : f32 to vector<16x128xf32>
    %24 = arith.maximumf %22, %23 : vector<16x128xf32>
    %c0_18 = arith.constant 0 : index
    %c0_19 = arith.constant 0 : index
    %25 = vector.load %arg8[%c0_18, %c0_19] : memref<16x128xf32, #tpu.memory_space<vmem>>, vector<16x128xf32>
    tpu.vector_store %arg8[%c0_18, %c0_19], %24 {strides = array<i32>} : memref<16x128xf32, #tpu.memory_space<vmem>>, vector<16x128xf32>,
    return
  }
  func.func @transform_0(%arg0: i32) -> (i32, i32) {
    %c0_i32 = arith.constant 0 : i32
    %c0_i32_0 = arith.constant 0 : i32
    return %arg0, %c0_i32 : i32, i32
  }
  func.func @transform_1(%arg0: i32) -> (i32, i32) {
    %c0_i32 = arith.constant 0 : i32
    %c0_i32_0 = arith.constant 0 : i32
    %c0_i32_1 = arith.constant 0 : i32
    return %c0_i32, %c0_i32_0 : i32, i32
  }
  func.func @transform_2(%arg0: i32) -> (i32, i32) {
    %c0_i32 = arith.constant 0 : i32
    %c0_i32_0 = arith.constant 0 : i32
    %c0_i32_1 = arith.constant 0 : i32
    return %c0_i32, %c0_i32_0 : i32, i32
  }
  func.func @transform_3(%arg0: i32) -> (i32, i32) {
    %c0_i32 = arith.constant 0 : i32
    %c0_i32_0 = arith.constant 0 : i32
    %c0_i32_1 = arith.constant 0 : i32
    return %c0_i32, %c0_i32_0 : i32, i32
  }
  func.func @transform_4(%arg0: i32) -> (i32, i32) {
    %c0_i32 = arith.constant 0 : i32
    %c0_i32_0 = arith.constant 0 : i32
    %c0_i32_1 = arith.constant 0 : i32
    return %c0_i32, %c0_i32_0 : i32, i32
  }
  func.func @transform_5(%arg0: i32) -> (i32, i32) {
    %c0_i32 = arith.constant 0 : i32
    %c0_i32_0 = arith.constant 0 : i32
    %c0_i32_1 = arith.constant 0 : i32
    return %c0_i32, %c0_i32_0 : i32, i32
  }
  func.func @transform_6(%arg0: i32) -> (i32, i32) {
    %c0_i32 = arith.constant 0 : i32
    %c0_i32_0 = arith.constant 0 : i32
    %c0_i32_1 = arith.constant 0 : i32
    return %c0_i32, %c0_i32_0 : i32, i32
  }
  func.func @transform_7(%arg0: i32) -> (i32, i32) {
    %c0_i32 = arith.constant 0 : i32
    %c0_i32_0 = arith.constant 0 : i32
    return %arg0, %c0_i32 : i32, i32
  }
}

</mosaic_0001>

<bundles_post_ra>
// kernel: tpu_custom_call.1
= control target key start
LH: loop header
LB: loop body
LE: loop exit
PB: predicated region body
PF: predicated region fallthrough
CT: control target
= control target key end

     0   :  { %12 = vsyncpa [#allocation3], 0  ;;  %s644_s0 = inlined_call_operand.vmem [shape: f32[16,8], index: 0, kind: input, shape index: {}]   ;;  %s645_s1 = inlined_call_operand.vmem [shape: bf16[8,128], index: 1, kind: input, shape index: {}]   ;;  %s646_s2 = inlined_call_operand.vmem [shape: f32[1,128], index: 2, kind: input, shape index: {}]   ;;  %s647_s3 = inlined_call_operand.hbm [shape: bf16[128,128], index: 3, kind: input, shape index: {}]   ;;  %s648_s4 = inlined_call_operand.vmem [shape: f32[1,128], index: 4, kind: input, shape index: {}]   ;;  %s649_s5 = inlined_call_operand.hbm [shape: bf16[128,128], index: 5, kind: input, shape index: {}]   ;;  %s650_s6 = inlined_call_operand.vmem [shape: f32[1,128], index: 6, kind: input, shape index: {}]   ;;  %s651_s7 = inlined_call_operand.hbm [shape: f32[16,128], index: 7, kind: output, shape index: {}]  }
   0x1   :  { %13 = vsyncpa [#allocation6], 0 }
   0x2   :  { %14 = vsyncpa [#allocation4], 0  ;;  %s545_s24 = smov [#allocation2]  }
   0x3   :  { %s26_s25 = sshll.u32 %s545_s24, 4  ;;  %s27_s25 = int_to_ptr.vmem [resolvable:$true] %s26_s25 }
   0x4   :  { %s487_s26 = scalar_lea.vmem %s27_s25, 1024  ;;  %p492_p1 = scmp.lt.s32.totalorder %s27_s25, %s27_s25 }
   0x5   :  { %p488_p0 = scmp.ne.s32.totalorder %s27_s25, %s487_s26  ;;  %p493_p2 = scmp.lt.s32.totalorder %s487_s26, %s487_s26 }
   0x7   :  { %p494_p3 = por %p493_p2, %p492_p1 }
   0x9   :  { %p495_p4 = pnand %p494_p3, %p488_p0 }
   0xb   :  { %498 = shalt.err (!%p495_p4)
}
   0xc   :  { %s546_s27 = smov 64   ;;  %s547_s28 = smov 4  }
   0xd   :  { %32 = dma.hbm_to_vmem [thread:$0]  %s647_s3, 1024, %s27_s25, [#allocation3], %s546_s27, %s546_s27, %s547_s28  }
   0xe   :  { %s548_s8 = smov [#allocation5]  }
   0xf   :  { %s40_s9 = sshll.u32 %s548_s8, 4  ;;  %s41_s9 = int_to_ptr.vmem [resolvable:$true] %s40_s9 }
  0x10   :  { %s507_s10 = scalar_lea.vmem %s41_s9, 1024  ;;  %p512_p6 = scmp.lt.s32.totalorder %s41_s9, %s41_s9 }
  0x11   :  { %p508_p5 = scmp.ne.s32.totalorder %s41_s9, %s507_s10  ;;  %p513_p7 = scmp.lt.s32.totalorder %s507_s10, %s507_s10 }
  0x13   :  { %p514_p8 = por %p513_p7, %p512_p6 }
  0x15   :  { %p515_p9 = pnand %p514_p8, %p508_p5 }
  0x17   :  { %518 = shalt.err (!%p515_p9)
}
  0x18   :  { %46 = dma.hbm_to_vmem [thread:$0]  %s649_s5, 1024, %s41_s9, [#allocation6], %s546_s27, %s546_s27, %s547_s28  }
  0x19   :  { %539 = dma.done.wait [#allocation3], 1024  }
  0x1a   :  { %540 = vsyncadd [#allocation3], 4294966272 }
  0x1b   :  { %541 = dma.done.wait [#allocation6], 1024  }
  0x1c   :  { %542 = vsyncadd [#allocation6], 4294966272  ;;  %v549_v0 = vmov 0.0   ;;  %vm550_vm0 = vmmov 0   ;;  %vm71_vm1 = vcmask 1043456   ;;  %v56_v2 = vld [vmem:[%s644_s0] sm:$0xff] }
  0x1d   :  { %408 = vmatprep.subr.bf16.mxu0 %v549_v0  ;;  %410 = vmatprep.mubr.msk.bf16.mxu0 %vm550_vm0, %v549_v0  ;;  %v59_v1 = vld [vmem:[%s645_s1] sm:$0xf]  ;;  %v57_v3 = vld [vmem:[%s644_s0 + $0x8] sm:$0xff]  ;;  %v463_v6 = vld [vmem:[#allocation2 + $0x38] sm:$0xff]   ;;  %vm67_vm2 = vcmask 64512   ;;  %s551_s20 = smov [#allocation7]  }
  0x1e   :  { %414 = vmatprep.subr.bf16.mxu1 %v549_v0  ;;  %430 = vmatprep.mubr.msk.bf16.mxu1 %vm550_vm0, %v549_v0  ;;  %v73_v4 = vsel %vm71_vm1, %v59_v1, 0  ;;  %v58_v5 = vpack.c.bf16 %v57_v3, %v56_v2  ;;  %v464_v7 = vld [vmem:[#allocation2 + $0x30] sm:$0xff]   ;;  %v465_v8 = vld [vmem:[#allocation2 + $0x28] sm:$0xff]   ;;  %v466_v9 = vld [vmem:[#allocation2 + $0x20] sm:$0xff]  }
  0x1f   :  { %409 = vmatpush3.bf16.msra.mxu0 %v73_v4  ;;  %415 = vmatpush3.bf16.msra.mxu1 %v463_v6  ;;  %v467_v10 = vld [vmem:[#allocation2 + $0x18] sm:$0xff]   ;;  %v468_v11 = vld [vmem:[#allocation2 + $0x10] sm:$0xff]   ;;  %v469_v12 = vld [vmem:[#allocation2 + $0x8] sm:$0xff]  }
  0x20   :  { %434 = vmatprep.subr.bf16.mxu0 %v549_v0  ;;  %416 = vmatprep.subr.bf16.mxu1 %v549_v0  ;;  %v470_v13 = vld [vmem:[#allocation2] sm:$0xff]   ;;  %v471_v14 = vld [vmem:[#allocation5 + $0x38] sm:$0xff]   ;;  %v472_v15 = vld [vmem:[#allocation5 + $0x30] sm:$0xff]  }
  0x21   :  { %v473_v16 = vld [vmem:[#allocation5 + $0x28] sm:$0xff]   ;;  %v474_v17 = vld [vmem:[#allocation5 + $0x20] sm:$0xff]   ;;  %v475_v18 = vld [vmem:[#allocation5 + $0x18] sm:$0xff]  }
  0x22   :  { %411 = vmatmul.mubr.msk.bf16.vlgmr.msra.gmra.mxu0 %vm67_vm2, %v58_v5  ;;  %v368_v19 = vld [vmem:[%s646_s2] ss:$0 sm:$0xff]  ;;  %v476_v29 = vld [vmem:[#allocation5 + $0x10] sm:$0xff]   ;;  %v477_v30 = vld [vmem:[#allocation5 + $0x8] sm:$0xff]  }
  0x23   :  { %450 = vmatprep.mubr.msk.bf16.mxu0 %vm550_vm0, %v549_v0  ;;  %417 = vmatpush3.bf16.msra.mxu1 %v464_v7  ;;  %v478_v31 = vld [vmem:[#allocation5] sm:$0xff]  }
  0x24   :  { %418 = vmatprep.subr.bf16.mxu1 %v549_v0  ;;  %435 = vmatpush3.bf16.msra.mxu0 %v471_v14  ;;  %v370_v32 = vld [vmem:[%s648_s4] ss:$0 sm:$0xff]  ;;  %s355_s4 = sshll.u32 %s551_s20, 4  ;;  %s356_s4 = int_to_ptr.vmem [resolvable:$true] %s355_s4 }
  0x25   :  { %436 = vmatprep.subr.bf16.mxu0 %v549_v0  ;;  %v379_v42 = vld [vmem:[%s650_s6] ss:$0 sm:$0xff]  ;;  %s519_s21 = scalar_lea.vmem %s356_s4, 256  ;;  %p524_p11 = scmp.lt.s32.totalorder %s356_s4, %s356_s4 }
  0x26   :  { %p520_p10 = scmp.ne.s32.totalorder %s356_s4, %s519_s21  ;;  %p525_p12 = scmp.lt.s32.totalorder %s519_s21, %s519_s21 }
  0x27   :  { %419 = vmatpush3.bf16.msra.mxu1 %v465_v8 }
  0x28   :  { %420 = vmatprep.subr.bf16.mxu1 %v549_v0  ;;  %437 = vmatpush3.bf16.msra.mxu0 %v472_v15  ;;  %p526_p13 = por %p525_p12, %p524_p11 }
  0x29   :  { %438 = vmatprep.subr.bf16.mxu0 %v549_v0 }
  0x2a   :  { %p527_p0 = pnand %p526_p13, %p520_p10 }
  0x2b   :  { %421 = vmatpush3.bf16.msra.mxu1 %v466_v9 }
  0x2c   :  { %422 = vmatprep.subr.bf16.mxu1 %v549_v0  ;;  %439 = vmatpush3.bf16.msra.mxu0 %v473_v16 }
  0x2d   :  { %440 = vmatprep.subr.bf16.mxu0 %v549_v0 }
  0x2f   :  { %423 = vmatpush3.bf16.msra.mxu1 %v467_v10 }
  0x30   :  { %424 = vmatprep.subr.bf16.mxu1 %v549_v0  ;;  %441 = vmatpush3.bf16.msra.mxu0 %v474_v17 }
  0x31   :  { %442 = vmatprep.subr.bf16.mxu0 %v549_v0 }
  0x33   :  { %425 = vmatpush3.bf16.msra.mxu1 %v468_v11 }
  0x34   :  { %426 = vmatprep.subr.bf16.mxu1 %v549_v0  ;;  %443 = vmatpush3.bf16.msra.mxu0 %v475_v18 }
  0x35   :  { %444 = vmatprep.subr.bf16.mxu0 %v549_v0 }
  0x37   :  { %427 = vmatpush3.bf16.msra.mxu1 %v469_v12 }
  0x38   :  { %428 = vmatprep.subr.bf16.mxu1 %v549_v0  ;;  %445 = vmatpush3.bf16.msra.mxu0 %v476_v29 }
  0x39   :  { %446 = vmatprep.subr.bf16.mxu0 %v549_v0 }
  0x3b   :  { %429 = vmatpush3.bf16.msra.mxu1 %v470_v13 }
  0x3c   :  { %447 = vmatpush3.bf16.msra.mxu0 %v477_v30 }
  0x3d   :  { %448 = vmatprep.subr.bf16.mxu0 %v549_v0 }
  0x40   :  { %449 = vmatpush3.bf16.msra.mxu0 %v478_v31 }
  0xe2   :  { %v109_v20 = vpop.f32.mrf.mxu0 }
  0xe3   :  { %v110_v22 = vadd.f32 %v368_v19, %v109_v20 }
  0xe4   :  { %v412_v21 = vpop.f32.mrf.mxu0 }
  0xe5   :  { %v116_v26 = vmax.f32 %v110_v22, 0.0 }
  0xe6   :  { %v112_v23 = vpop.f32.mrf.mxu0 }
  0xe7   :  { %v113_v24 = vadd.f32 %v368_v19, %v112_v23 }
  0xe8   :  { %v413_v25 = vpop.f32.mrf.mxu0 }
  0xe9   :  { %v117_v27 = vmax.f32 %v113_v24, 0.0 }
  0xeb   :  { %v118_v28 = vpack.c.bf16 %v117_v27, %v116_v26 }
  0xed   :  { %431 = vmatmul.mubr.bf16.vlgmr.msra.gmra.mxu1 %v118_v28 }
 0x1ad   :  { %v224_v33 = vpop.f32.mrf.mxu1 }
 0x1ae   :  { %v225_v35 = vadd.f32 %v370_v32, %v224_v33 }
 0x1af   :  { %v432_v34 = vpop.f32.mrf.mxu1 }
 0x1b0   :  { %v231_v39 = vmax.f32 %v225_v35, 0.0 }
 0x1b1   :  { %v227_v36 = vpop.f32.mrf.mxu1 }
 0x1b2   :  { %v228_v37 = vadd.f32 %v370_v32, %v227_v36 }
 0x1b3   :  { %v433_v38 = vpop.f32.mrf.mxu1 }
 0x1b4   :  { %v232_v40 = vmax.f32 %v228_v37, 0.0 }
 0x1b6   :  { %v233_v41 = vpack.c.bf16 %v232_v40, %v231_v39 }
 0x1b8   :  { %451 = vmatmul.mubr.bf16.vlgmr.msra.gmra.mxu0 %v233_v41 }
 0x278   :  { %v339_v43 = vpop.f32.mrf.mxu0 }
 0x279   :  { %v340_v44 = vadd.f32 %v379_v42, %v339_v43 }
 0x27a   :  { %v452_v45 = vpop.f32.mrf.mxu0 }
 0x27b   :  { %v346_v46 = vmax.f32 %v340_v44, 0.0 }
 0x27c   :  { %v342_v47 = vpop.f32.mrf.mxu0 }
 0x27d   :  { %348 = vst [vmem:[#allocation7] sm:$0xff] %v346_v46  ;;  %v343_v48 = vadd.f32 %v379_v42, %v342_v47 }
 0x27e   :  { %v453_v49 = vpop.f32.mrf.mxu0 }
 0x27f   :  { %v347_v50 = vmax.f32 %v343_v48, 0.0 }
 0x281   :  { %349 = vst [vmem:[#allocation7 + $0x8] sm:$0xff] %v347_v50 }
 0x282   :  { %530 = shalt.err (!%p527_p0)
}
 0x283   :  { %s552_s6 = smov 128   ;;  %s553_s22 = smov 8  }
 0x284   :  { %361 = dma.vmem_to_hbm [thread:$0]  %s356_s4, 256, %s651_s7, [#allocation4], %s552_s6, %s552_s6, %s553_s22  }
 0x285   :  { %543 = dma.done.wait [#allocation4], 256  }
 0x286   :  { %544 = vsyncadd [#allocation4], 4294967040 }
 0x287   :  { %365 = vsyncpa [#allocation3], 1 }
 0x288   :  { %366 = vsyncpa [#allocation6], 1 }
 0x289   :  { %367 = vsyncpa [#allocation4], 1 }

</bundles_post_ra>
